<compile_context>
chip_gen: v7x
topology: tpu7x:2x2x1
jax: 0.10.0
libtpu: 0.0.40
codegen_flags: <defaults>
</compile_context>

<pallas_src>
import functools

import jax
import jax.numpy as jnp
from jax.experimental import pallas as pl
from jax.experimental.pallas import tpu as pltpu


def _round_up(x: int, m: int) -> int:
    return ((x + m - 1) // m) * m


def _iou_kernel(inp_ref, tgt_ref, out_ref, inter_acc, s_acc, *, smooth, hw, cb):
    # inp_ref / tgt_ref: (TR, CB) tile in VMEM
    # out_ref:           (TR, 1)  -- resident across the col axis (index_map ignores j)
    # inter_acc / s_acc: (TR, 1) f32 scratch accumulators
    j = pl.program_id(1)
    ncb = pl.num_programs(1)

    x = inp_ref[...]
    t = tgt_ref[...].astype(jnp.float32)

    # (sigmoid(x) > 0.5) == (x > 0), exactly (including x == 0 and NaN).
    pos = x > 0
    pred = pos.astype(jnp.float32)

    if hw % cb != 0:
        # Last H*W block is partial: mask out-of-range columns (compile-time
        # branch; for full blocks the compare is all-true and free filler).
        col = jax.lax.broadcasted_iota(jnp.int32, pred.shape, 1) + j * cb
        valid = col < hw
        pred = jnp.where(valid, pred, 0.0)
        t = jnp.where(valid, t, 0.0)

    # Two reduction trees instead of three:
    #   inter = sum(pred * t)  ==  sum(where(pos, t, 0))
    #   s     = sum(pred) + sum(t)  ==  sum(pred + t)
    inter_blk = jnp.sum(jnp.where(pos, t, 0.0), axis=-1, keepdims=True)
    s_blk = jnp.sum(pred + t, axis=-1, keepdims=True)

    @pl.when(j == 0)
    def _():
        inter_acc[...] = jnp.zeros_like(inter_acc)
        s_acc[...] = jnp.zeros_like(s_acc)

    inter_acc[...] += inter_blk
    s_acc[...] += s_blk

    @pl.when(j == ncb - 1)
    def _():
        inter = inter_acc[...]
        union = s_acc[...] - inter
        iou = (inter + smooth) / (union + smooth)
        out_ref[...] = iou.astype(out_ref.dtype)


def calc_iou(inputs: jax.Array, targets: jax.Array, smooth: float = 1e-07) -> jax.Array:
    """inputs, targets: [B, N, H, W] -> IoU per instance [B, N] (float32)."""
    B, N, H, W = inputs.shape
    rows = B * N
    hw = H * W

    inp2 = inputs.reshape(rows, hw)
    tgt2 = targets.reshape(rows, hw)

    LANE, SUB = 128, 8

    # Column (lane) block over H*W: big and lane-dense, capped so tiles stay
    # well inside every generation's VMEM (v7x TC has only 64 MiB physical).
    cb = min(4096, _round_up(hw, LANE))
    # Row (sublane) block: target ~4 MiB per input block (f32 worst case).
    target_block_bytes = 4 * 1024 * 1024
    tr = target_block_bytes // (cb * 4)
    tr = max(SUB, min(2048, (tr // SUB) * SUB))
    tr = min(tr, _round_up(rows, SUB))

    n_row_tiles = pl.cdiv(rows, tr)
    n_col_tiles = pl.cdiv(hw, cb)
    rows_pad = n_row_tiles * tr  # pad only the tiny output, never the inputs

    grid = (n_row_tiles, n_col_tiles)

    out = pl.pallas_call(
        functools.partial(_iou_kernel, smooth=smooth, hw=hw, cb=cb),
        out_shape=jax.ShapeDtypeStruct((rows_pad, 1), jnp.float32),
        grid_spec=pltpu.PrefetchScalarGridSpec(
            num_scalar_prefetch=0,
            grid=grid,
            in_specs=[
                pl.BlockSpec((tr, cb), lambda i, j: (i, j)),
                pl.BlockSpec((tr, cb), lambda i, j: (i, j)),
            ],
            out_specs=pl.BlockSpec((tr, 1), lambda i, j: (i, 0)),
            scratch_shapes=[
                pltpu.VMEM((tr, 1), jnp.float32),  # intersection accumulator
                pltpu.VMEM((tr, 1), jnp.float32),  # sum(pred) + sum(tgt) accumulator
            ],
        ),
        compiler_params=pltpu.CompilerParams(
            dimension_semantics=("parallel", "arbitrary"),
            # ~16.5 MiB double-buffered footprint; raised limit keeps v5e's
            # 16 MiB default from rejecting the tiles (safe on v6e/v7x too).
            vmem_limit_bytes=48 * 1024 * 1024,
        ),
    )(inp2, tgt2)

    return out[:rows, 0].reshape(B, N)


if __name__ == "__main__":
    key = jax.random.PRNGKey(0)
    k1, k2 = jax.random.split(key)

    B, N, H, W = 2, 4, 16, 16
    # Predicted mask logits (any real values) and binary ground-truth masks.
    inputs = jax.random.normal(k1, (B, N, H, W), dtype=jnp.float32)
    targets = (jax.random.uniform(k2, (B, N, H, W)) > 0.5).astype(jnp.float32)

    iou = calc_iou(inputs, targets)
    jax.block_until_ready(iou)

    # Pure-JAX reference (exact PyTorch math, sigmoid included).
    pred = (jax.nn.sigmoid(inputs) > 0.5).astype(jnp.float32)
    pr = pred.reshape(B, N, -1)
    tg = targets.reshape(B, N, -1)
    inter = jnp.sum(pr * tg, -1)
    union = jnp.sum(pr, -1) + jnp.sum(tg, -1) - inter
    ref = (inter + 1e-07) / (union + 1e-07)

    assert iou.shape == (B, N)
    assert jnp.allclose(iou, ref, atol=1e-5, rtol=1e-5)
    print("KERNEL_OK")
</pallas_src>

<mosaic_0001>
module attributes {stable_mosaic.version = 11 : i64} {
  func.func @_iou_kernel(%arg0: i32, %arg1: i32, %arg2: memref<8x256xf32, #tpu.memory_space<vmem>>, %arg3: memref<8x256xf32, #tpu.memory_space<vmem>>, %arg4: memref<8x1xf32, #tpu.memory_space<vmem>>, %arg5: memref<8x1xf32, #tpu.memory_space<vmem>>, %arg6: memref<8x1xf32, #tpu.memory_space<vmem>>) attributes {dimension_semantics = [#tpu.dimension_semantics<parallel>, #tpu.dimension_semantics<arbitrary>], iteration_bounds = array<i64: 1, 1>, scalar_prefetch = 0 : i64, scratch_operands = 2 : i64, tpu.core_type = #tpu.core_type<tc>, window_params = [{transform_indices = @transform_0, window_bounds = array<i64: 8, 256>}, {transform_indices = @transform_1, window_bounds = array<i64: 8, 256>}, {transform_indices = @transform_2, window_bounds = array<i64: 8, 1>}]} {
    %c0 = arith.constant 0 : index
    %c0_0 = arith.constant 0 : index
    %0 = vector.load %arg2[%c0, %c0_0] : memref<8x256xf32, #tpu.memory_space<vmem>>, vector<8x256xf32>
    %c0_1 = arith.constant 0 : index
    %c0_2 = arith.constant 0 : index
    %1 = vector.load %arg3[%c0_1, %c0_2] : memref<8x256xf32, #tpu.memory_space<vmem>>, vector<8x256xf32>
    %cst = arith.constant 0.000000e+00 : f32
    %2 = vector.broadcast %cst : f32 to vector<8x256xf32>
    %3 = arith.cmpf ogt, %0, %2 : vector<8x256xf32>
    %4 = arith.extui %3 : vector<8x256xi1> to vector<8x256xi32>
    %5 = arith.sitofp %4 : vector<8x256xi32> to vector<8x256xf32>
    %cst_3 = arith.constant 0.000000e+00 : f32
    %6 = vector.broadcast %cst_3 : f32 to vector<8x256xf32>
    %7 = arith.select %3, %1, %6 : vector<8x256xi1>, vector<8x256xf32>
    %cst_4 = arith.constant dense<0.000000e+00> : vector<8xf32>
    %8 = vector.multi_reduction <add>, %7, %cst_4 [1] : vector<8x256xf32> to vector<8xf32>
    %9 = vector.shape_cast %8 : vector<8xf32> to vector<8x1xf32>
    %10 = arith.addf %5, %1 : vector<8x256xf32>
    %cst_5 = arith.constant dense<0.000000e+00> : vector<8xf32>
    %11 = vector.multi_reduction <add>, %10, %cst_5 [1] : vector<8x256xf32> to vector<8xf32>
    %12 = vector.shape_cast %11 : vector<8xf32> to vector<8x1xf32>
    %c0_i32 = arith.constant 0 : i32
    %13 = arith.cmpi eq, %arg1, %c0_i32 : i32
    %14 = arith.extui %13 : i1 to i32
    %c0_i32_6 = arith.constant 0 : i32
    %15 = arith.cmpi ne, %14, %c0_i32_6 : i32
    scf.if %15 {
      %cst_17 = arith.constant 0.000000e+00 : f32
      %25 = vector.broadcast %cst_17 : f32 to vector<8x1xf32>
      %c0_18 = arith.constant 0 : index
      %c0_19 = arith.constant 0 : index
      %26 = vector.load %arg5[%c0_18, %c0_19] : memref<8x1xf32, #tpu.memory_space<vmem>>, vector<8x1xf32>
      tpu.vector_store %arg5[%c0_18, %c0_19], %25 {strides = array<i32>} : memref<8x1xf32, #tpu.memory_space<vmem>>, vector<8x1xf32>,
      %cst_20 = arith.constant 0.000000e+00 : f32
      %27 = vector.broadcast %cst_20 : f32 to vector<8x1xf32>
      %c0_21 = arith.constant 0 : index
      %c0_22 = arith.constant 0 : index
      %28 = vector.load %arg6[%c0_21, %c0_22] : memref<8x1xf32, #tpu.memory_space<vmem>>, vector<8x1xf32>
      tpu.vector_store %arg6[%c0_21, %c0_22], %27 {strides = array<i32>} : memref<8x1xf32, #tpu.memory_space<vmem>>, vector<8x1xf32>,
    } else {
    }
    %c0_7 = arith.constant 0 : index
    %c0_8 = arith.constant 0 : index
    %16 = vector.load %arg5[%c0_7, %c0_8] : memref<8x1xf32, #tpu.memory_space<vmem>>, vector<8x1xf32>
    %17 = arith.addf %16, %9 : vector<8x1xf32>
    %c0_9 = arith.constant 0 : index
    %c0_10 = arith.constant 0 : index
    %18 = vector.load %arg5[%c0_9, %c0_10] : memref<8x1xf32, #tpu.memory_space<vmem>>, vector<8x1xf32>
    tpu.vector_store %arg5[%c0_9, %c0_10], %17 {strides = array<i32>} : memref<8x1xf32, #tpu.memory_space<vmem>>, vector<8x1xf32>,
    %c0_11 = arith.constant 0 : index
    %c0_12 = arith.constant 0 : index
    %19 = vector.load %arg6[%c0_11, %c0_12] : memref<8x1xf32, #tpu.memory_space<vmem>>, vector<8x1xf32>
    %20 = arith.addf %19, %12 : vector<8x1xf32>
    %c0_13 = arith.constant 0 : index
    %c0_14 = arith.constant 0 : index
    %21 = vector.load %arg6[%c0_13, %c0_14] : memref<8x1xf32, #tpu.memory_space<vmem>>, vector<8x1xf32>
    tpu.vector_store %arg6[%c0_13, %c0_14], %20 {strides = array<i32>} : memref<8x1xf32, #tpu.memory_space<vmem>>, vector<8x1xf32>,
    %c0_i32_15 = arith.constant 0 : i32
    %22 = arith.cmpi eq, %arg1, %c0_i32_15 : i32
    %23 = arith.extui %22 : i1 to i32
    %c0_i32_16 = arith.constant 0 : i32
    %24 = arith.cmpi ne, %23, %c0_i32_16 : i32
    scf.if %24 {
      %c0_17 = arith.constant 0 : index
      %c0_18 = arith.constant 0 : index
      %25 = vector.load %arg5[%c0_17, %c0_18] : memref<8x1xf32, #tpu.memory_space<vmem>>, vector<8x1xf32>
      %c0_19 = arith.constant 0 : index
      %c0_20 = arith.constant 0 : index
      %26 = vector.load %arg6[%c0_19, %c0_20] : memref<8x1xf32, #tpu.memory_space<vmem>>, vector<8x1xf32>
      %27 = arith.subf %26, %25 : vector<8x1xf32>
      %cst_21 = arith.constant 1.000000e-07 : f32
      %28 = vector.broadcast %cst_21 : f32 to vector<8x1xf32>
      %29 = arith.addf %25, %28 : vector<8x1xf32>
      %cst_22 = arith.constant 1.000000e-07 : f32
      %30 = vector.broadcast %cst_22 : f32 to vector<8x1xf32>
      %31 = arith.addf %27, %30 : vector<8x1xf32>
      %32 = arith.divf %29, %31 : vector<8x1xf32>
      %c0_23 = arith.constant 0 : index
      %c0_24 = arith.constant 0 : index
      %33 = vector.load %arg4[%c0_23, %c0_24] : memref<8x1xf32, #tpu.memory_space<vmem>>, vector<8x1xf32>
      tpu.vector_store %arg4[%c0_23, %c0_24], %32 {strides = array<i32>} : memref<8x1xf32, #tpu.memory_space<vmem>>, vector<8x1xf32>,
    } else {
    }
    return
  }
  func.func @transform_0(%arg0: i32, %arg1: i32) -> (i32, i32) {
    %c0_i32 = arith.constant 0 : i32
    return %arg0, %arg1 : i32, i32
  }
  func.func @transform_1(%arg0: i32, %arg1: i32) -> (i32, i32) {
    %c0_i32 = arith.constant 0 : i32
    return %arg0, %arg1 : i32, i32
  }
  func.func @transform_2(%arg0: i32, %arg1: i32) -> (i32, i32) {
    %c0_i32 = arith.constant 0 : i32
    %c0_i32_0 = arith.constant 0 : i32
    return %arg0, %c0_i32 : i32, i32
  }
}

</mosaic_0001>

<bundles_post_ra>
// kernel: tpu_custom_call.1
= control target key start
LH: loop header
LB: loop body
LE: loop exit
PB: predicated region body
PF: predicated region fallthrough
CT: control target
= control target key end

     0   :  { %7 = vsyncpa [#allocation5], 0  ;;  %s191_s0 = inlined_call_operand.hbm [shape: f32[8,256], index: 0, kind: input, shape index: {}]   ;;  %s192_s1 = inlined_call_operand.hbm [shape: f32[8,256], index: 1, kind: input, shape index: {}]   ;;  %s193_s2 = inlined_call_operand.vmem [shape: f32[8,1], index: 2, kind: output, shape index: {}]  }
   0x1   :  { %8 = vsyncpa [#allocation7], 0  ;;  %s141_s9 = smov [#allocation4]   ;;  %s142_s11 = smov [#allocation6]  }
   0x2   :  { %s15_s10 = sshll.u32 %s141_s9, 4  ;;  %s25_s12 = sshll.u32 %s142_s11, 4  ;;  %s16_s10 = int_to_ptr.vmem [resolvable:$true] %s15_s10  ;;  %s26_s12 = int_to_ptr.vmem [resolvable:$true] %s25_s12 }
   0x3   :  { %s93_s15 = scalar_lea.hbm %s191_s0, 256 }
   0x4   :  { %p94_p0 = scmp.ne.s32.totalorder %s191_s0, %s93_s15  ;;  %p97_p1 = scmp.lt.u32.totalorder %s93_s15, %s191_s0 }
   0x6   :  { %p99_p2 = pnand %p97_p1, %p94_p0 }
   0x8   :  { %102 = shalt.err (!%p99_p2)
}
   0x9   :  { %s103_s20 = scalar_lea.vmem %s16_s10, 256  ;;  %p108_p4 = scmp.lt.s32.totalorder %s16_s10, %s16_s10 }
   0xa   :  { %p104_p3 = scmp.ne.s32.totalorder %s16_s10, %s103_s20  ;;  %p109_p5 = scmp.lt.s32.totalorder %s103_s20, %s103_s20 }
   0xc   :  { %p110_p6 = por %p109_p5, %p108_p4 }
   0xe   :  { %p111_p7 = pnand %p110_p6, %p104_p3 }
  0x10   :  { %114 = shalt.err (!%p111_p7)
}
  0x11   :  { %18 = dma.hbm_to_vmem [thread:$0]  %s191_s0, 256, %s16_s10, [#allocation5]  }
  0x12   :  { %s115_s25 = scalar_lea.hbm %s192_s1, 256 }
  0x13   :  { %p116_p8 = scmp.ne.s32.totalorder %s192_s1, %s115_s25  ;;  %p119_p9 = scmp.lt.u32.totalorder %s115_s25, %s192_s1 }
  0x15   :  { %p121_p10 = pnand %p119_p9, %p116_p8 }
  0x17   :  { %124 = shalt.err (!%p121_p10)
}
  0x18   :  { %s125_s30 = scalar_lea.vmem %s26_s12, 256  ;;  %p130_p12 = scmp.lt.s32.totalorder %s26_s12, %s26_s12 }
  0x19   :  { %p126_p11 = scmp.ne.s32.totalorder %s26_s12, %s125_s30  ;;  %p131_p13 = scmp.lt.s32.totalorder %s125_s30, %s125_s30 }
  0x1b   :  { %p132_p0 = por %p131_p13, %p130_p12 }
  0x1d   :  { %p133_p1 = pnand %p132_p0, %p126_p11 }
  0x1f   :  { %136 = shalt.err (!%p133_p1)
}
  0x20   :  { %28 = dma.hbm_to_vmem [thread:$0]  %s192_s1, 256, %s26_s12, [#allocation7]  }
  0x21   :  { %137 = dma.done.wait [#allocation5], 256  }
  0x22   :  { %138 = vsyncadd [#allocation5], 4294967040 }
  0x23   :  { %139 = dma.done.wait [#allocation7], 256  }
  0x24   :  { %140 = vsyncadd [#allocation7], 4294967040  ;;  %vm59_vm0 = vcmask 7168   ;;  %v143_v0 = vmov 0.0   ;;  %v35_v1 = vld [vmem:[#allocation4] sm:$0xff]  ;;  %v36_v2 = vld [vmem:[#allocation4 + $0x8] sm:$0xff] }
  0x25   :  { %60 = vst.msk [vmem:[#allocation2] sm:$0xff] %vm59_vm0, %v143_v0  ;;  %61 = vst.msk [vmem:[#allocation3] sm:$0xff] %vm59_vm0, %v143_v0  ;;  %v37_v3 = vld [vmem:[#allocation6] sm:$0xff]  ;;  %v38_v4 = vld [vmem:[#allocation6 + $0x8] sm:$0xff]  ;;  %vm39_vm1 = vcmp.gt.f32.partialorder %v35_v1, 0.0  ;;  %vm40_vm2 = vcmp.gt.f32.partialorder %v36_v2, 0.0 }
  0x26   :  { %v87_v5 = vsel %vm40_vm2, 1.0, %v143_v0  ;;  %v45_v6 = vsel %vm39_vm1, %v37_v3, 0.0  ;;  %v46_v7 = vsel %vm40_vm2, %v38_v4, 0.0  ;;  %v86_v8 = vsel %vm39_vm1, 1.0, %v143_v0 }
  0x27   :  { %v47_v9 = vadd.f32 %v46_v7, %v45_v6  ;;  %v51_v10 = vadd.f32 %v87_v5, %v38_v4  ;;  %v50_v11 = vadd.f32 %v86_v8, %v37_v3 }
  0x29   :  { %48 = vadd.xlane.f32.xlu0 %v47_v9  ;;  %v52_v12 = vadd.f32 %v51_v10, %v50_v11 }
  0x2c   :  { %v62_v13 = vld [vmem:[#allocation2] sm:$0xff]  ;;  %v66_v16 = vld [vmem:[#allocation3] sm:$0xff] }
  0x2d   :  { %53 = vadd.xlane.f32.xlu0 %v52_v12 }
  0xb6   :  { %v49_v14 = vpop.xlane.xlu0 %48 }
  0xb7   :  { %v63_v15 = vadd.f32 %v62_v13, %v49_v14 }
  0xb9   :  { %65 = vst.msk [vmem:[#allocation2] sm:$0xff] %vm59_vm0, %v63_v15 }
  0xba   :  { %v54_v17 = vpop.xlane.xlu0 %53 }
  0xbb   :  { %v67_v18 = vadd.f32 %v66_v16, %v54_v17 }
  0xbd   :  { %68 = vst.msk [vmem:[#allocation3] sm:$0xff] %vm59_vm0, %v67_v18 }
  0xc0   :  { %v72_v19 = vld [vmem:[#allocation2] sm:$0xff] }
  0xc1   :  { %v75_v23 = vadd.f32 1e-07, %v72_v19 }
  0xc4   :  { %v73_v20 = vld [vmem:[#allocation3] sm:$0xff] }
  0xc5   :  { %v74_v21 = vsub.f32 %v73_v20, %v72_v19 }
  0xc7   :  { %v76_v22 = vadd.f32 1e-07, %v74_v21 }
  0xc9   :  { %91 = vrcp.f32 %v76_v22 }
  0xd3   :  { %v92_v24 = vpop.eup %91 }
  0xd4   :  { %v78_v25 = vmul.f32 %v92_v24, %v75_v23 }
  0xd6   :  { %79 = vst.msk [vmem:[%s193_s2] sm:$0xff] %vm59_vm0, %v78_v25 }
  0xd7   :  { %84 = vsyncpa [#allocation5], 1 }
  0xd8   :  { %85 = vsyncpa [#allocation7], 1 }

</bundles_post_ra>
